<compile_context>
chip_gen: v6e
topology: v6e:2x2x1
jax: 0.10.0
libtpu: 0.0.40
codegen_flags: <defaults>
</compile_context>

<pallas_src>
import functools

import numpy as np
import jax
import jax.numpy as jnp
from jax.experimental import pallas as pl
from jax.experimental.pallas import tpu as pltpu


def _ode_block_kernel(dt, T, H, x0_ref, bg_ref, slab_ref, out_ref, states_sc):
    """x0_ref   : [B, 8]     augmented init (S0, I0, R0, 1, 0, 0, 0, 0)
       bg_ref   : [B, H]     beta/gamma batch features
       slab_ref : [112, 3H]  packed parameter slab (layout in wrapper)
       out_ref  : [T*B, 3]   softmax(S, I, R) probabilities (lane-packed)
       states_sc: [T*B, 3H]  packed (S | I | R) state for every timestep
    """
    B = x0_ref.shape[0]
    W = 3 * H

    # ---- unpack parameter slab (static, sublane-aligned ref slices) --------
    w1aug = slab_ref[0:8, :]               # rows 0:3 block-diag w1, row 3 = b1 tiled
    w3big = slab_ref[8:8 + W, :]           # [3H, 3H] block-diag w3 in lanes 0:12
    tail = slab_ref[8 + W:8 + W + 8, :]    # [8, 3H]
    b3_big = tail[0:1, :]                  # tiled b3 in lanes 0:12, zeros elsewhere
    ws2_big = tail[1:2, :]                 # tiled ws2 in lanes 0:12, zeros elsewhere
    bs2 = tail[2:3, 0:1]                   # [1, 1]

    # ---- initial ODE state: relu(linearS1) for S/I/R in ONE matmul ---------
    init = jnp.dot(x0_ref[...], w1aug, preferred_element_type=jnp.float32)
    init = jnp.maximum(init, 0.0)          # [B, 3H]
    S = init[:, 0:H]
    I = init[:, H:2 * H]
    R = init[:, 2 * H:3 * H]

    # Hoisted loop-invariant ODE coefficient.
    # TODO(synk): `odefunc` is an externally injected module in the PyTorch
    # code; deterministic synthetic elementwise SIR dynamics are used here
    # (beta = bg, gamma = 0.5*bg, d(bg)/dt = 0).
    beta = bg_ref[...]                     # [B, H]

    # ---- unrolled Euler integration; one lane-packed store per step --------
    for t in range(T):
        states_sc[t * B:(t + 1) * B, :] = jnp.concatenate([S, I, R], axis=-1)
        if t < T - 1:                      # no wasted update on the last step
            bi = beta * I
            bsi = bi * S
            gi = 0.5 * bi
            S = S - dt * bsi
            I = I + dt * (bsi - gi)
            R = R + dt * gi

    # ---- fused head over all T*B rows: linear3 -> ReLU -> linearS2 ---------
    big = states_sc[...]                   # [T*B, 3H]
    h = jnp.dot(big, w3big, preferred_element_type=jnp.float32) + b3_big
    h = jnp.maximum(h, 0.0)
    g = h * ws2_big                        # lanes 12:3H are exactly zero
    lS = jnp.sum(g[:, 0:4], axis=-1, keepdims=True) + bs2
    lI = jnp.sum(g[:, 4:8], axis=-1, keepdims=True) + bs2
    lR = jnp.sum(g[:, 8:12], axis=-1, keepdims=True) + bs2

    # Softmax over (S, I, R); single merged output store.
    m = jnp.maximum(jnp.maximum(lS, lI), lR)
    eS = jnp.exp(lS - m)
    eI = jnp.exp(lI - m)
    eR = jnp.exp(lR - m)
    denom = eS + eI + eR
    out_ref[...] = jnp.concatenate([eS, eI, eR], axis=-1) / denom


def _pack_params(params, H):
    """Pack all six tiny parameter tensors into one [112, 3H] f32 slab."""
    w1 = params["w1"].reshape(1, H)
    b1 = params["b1"].reshape(1, H)
    w3 = params["w3"]                      # [H, 4]
    b3 = params["b3"].reshape(1, 4)
    ws2 = params["ws2"].reshape(1, 4)
    bs2 = params["bs2"].reshape(())
    W = 3 * H
    slab = jnp.zeros((8 + W + 8, W), jnp.float32)
    for s in range(3):
        slab = slab.at[s, s * H:(s + 1) * H].set(w1[0])                       # w1 block-diag
        slab = slab.at[8 + s * H:8 + (s + 1) * H, 4 * s:4 * (s + 1)].set(w3)  # w3 block-diag
    slab = slab.at[3, :].set(jnp.tile(b1[0], 3))
    slab = slab.at[8 + W + 0, 0:12].set(jnp.tile(b3[0], 3))
    slab = slab.at[8 + W + 1, 0:12].set(jnp.tile(ws2[0], 3))
    slab = slab.at[8 + W + 2, :].set(bs2)
    return slab


def ode_block_forward(x, params, max_time, delta_t):
    B = x.shape[0]
    H = params["w1"].shape[1]
    assert B % 8 == 0, "batch must be a multiple of 8 (sublane-aligned stash stores)"
    T = int(np.arange(0.0, max_time, delta_t).shape[0])   # len(integration_time)
    TB = T * B
    W = 3 * H

    # Wrapper-side layout plumbing (free relative to launch/DMA fixed costs).
    x0_aug = jnp.zeros((B, 8), jnp.float32)
    x0_aug = x0_aug.at[:, 0:3].set(x[:, 0:3])
    x0_aug = x0_aug.at[:, 3].set(1.0)      # picks up the b1 row of the slab
    bg = x[:, 3:3 + H]
    slab = _pack_params(params, H)

    kernel = functools.partial(_ode_block_kernel, float(delta_t), T, H)

    def full(shape):
        return pl.BlockSpec(shape, lambda i: (0, 0))

    out = pl.pallas_call(
        kernel,
        out_shape=jax.ShapeDtypeStruct((TB, 3), jnp.float32),
        grid_spec=pltpu.PrefetchScalarGridSpec(
            num_scalar_prefetch=0,
            grid=(1,),
            in_specs=[full(x0_aug.shape), full(bg.shape), full(slab.shape)],
            out_specs=full((TB, 3)),
            scratch_shapes=[
                pltpu.VMEM((TB, W), jnp.float32),   # packed [T*B, 3H] states
            ],
        ),
        compiler_params=pltpu.CompilerParams(
            dimension_semantics=("arbitrary",)),
    )(x0_aug, bg, slab)

    # Reshape the merged (T*B, 3) slab back to torch's three (T, B, 1) outputs.
    out = out.reshape(T, B, 3)
    return out[..., 0:1], out[..., 1:2], out[..., 2:3]


def ode_block_reference(x, params, max_time, delta_t):
    """Pure-JAX reference matching the kernel semantics."""
    T = int(np.arange(0.0, max_time, delta_t).shape[0])
    w1, b1 = params["w1"], params["b1"]
    S = jax.nn.relu(x[:, 0:1] * w1 + b1)
    I = jax.nn.relu(x[:, 1:2] * w1 + b1)
    R = jax.nn.relu(x[:, 2:3] * w1 + b1)
    bg = x[:, 3:]
    beta, gamma = bg, 0.5 * bg
    sols = [(S, I, R)]
    for _ in range(T - 1):
        dS = -beta * S * I
        dI = beta * S * I - gamma * I
        dR = gamma * I
        S, I, R = S + delta_t * dS, I + delta_t * dI, R + delta_t * dR
        sols.append((S, I, R))

    def head(z):
        h = jax.nn.relu(z @ params["w3"] + params["b3"])
        return h @ params["ws2"] + params["bs2"]

    outs = []
    for (S, I, R) in sols:
        logits = jnp.concatenate([head(S), head(I), head(R)], axis=-1)
        outs.append(jax.nn.softmax(logits, axis=-1))
    out = jnp.stack(outs, axis=0)
    return out[..., 0:1], out[..., 1:2], out[..., 2:3]


if __name__ == "__main__":
    B = 8          # batch
    H = 32         # hidden1
    MAX_TIME = 1.0
    DELTA_T = 0.125   # -> 8 integration time points

    key = jax.random.PRNGKey(0)
    k_x, k_w1, k_b1, k_w3, k_b3, k_ws2, k_bs2 = jax.random.split(key, 7)

    # x = [S0, I0, R0, beta_gamma_batch(H)]  -> shape [B, 3 + H]
    x = jax.random.uniform(k_x, (B, 3 + H), dtype=jnp.float32)

    params = {
        "w1": 0.5 * jax.random.normal(k_w1, (1, H), dtype=jnp.float32),   # linearS1.weight^T
        "b1": 0.1 * jax.random.normal(k_b1, (1, H), dtype=jnp.float32),   # linearS1.bias
        "w3": 0.2 * jax.random.normal(k_w3, (H, 4), dtype=jnp.float32),   # linear3.weight^T
        "b3": 0.1 * jax.random.normal(k_b3, (1, 4), dtype=jnp.float32),   # linear3.bias
        "ws2": 0.3 * jax.random.normal(k_ws2, (4, 1), dtype=jnp.float32), # linearS2.weight^T
        "bs2": 0.1 * jax.random.normal(k_bs2, (1, 1), dtype=jnp.float32), # linearS2.bias
    }

    S_out, I_out, R_out = ode_block_forward(x, params, MAX_TIME, DELTA_T)
    jax.block_until_ready((S_out, I_out, R_out))

    S_ref, I_ref, R_ref = ode_block_reference(x, params, MAX_TIME, DELTA_T)
    np.testing.assert_allclose(np.asarray(S_out), np.asarray(S_ref), rtol=1e-5, atol=1e-5)
    np.testing.assert_allclose(np.asarray(I_out), np.asarray(I_ref), rtol=1e-5, atol=1e-5)
    np.testing.assert_allclose(np.asarray(R_out), np.asarray(R_ref), rtol=1e-5, atol=1e-5)

    print("KERNEL_OK")
</pallas_src>

<mosaic_0001>
module attributes {stable_mosaic.version = 11 : i64} {
  func.func @_ode_block_kernel(%arg0: i32, %arg1: memref<8x8xf32, #tpu.memory_space<vmem>>, %arg2: memref<8x32xf32, #tpu.memory_space<vmem>>, %arg3: memref<112x96xf32, #tpu.memory_space<vmem>>, %arg4: memref<64x3xf32, #tpu.memory_space<vmem>>, %arg5: memref<64x96xf32, #tpu.memory_space<vmem>>) attributes {dimension_semantics = [#tpu.dimension_semantics<arbitrary>], iteration_bounds = array<i64: 1>, scalar_prefetch = 0 : i64, scratch_operands = 1 : i64, tpu.core_type = #tpu.core_type<tc>, window_params = [{pipeline_mode = #tpu.pipeline_mode<synchronous>, transform_indices = @transform_0, window_bounds = array<i64: 8, 8>}, {pipeline_mode = #tpu.pipeline_mode<synchronous>, transform_indices = @transform_1, window_bounds = array<i64: 8, 32>}, {pipeline_mode = #tpu.pipeline_mode<synchronous>, transform_indices = @transform_2, window_bounds = array<i64: 112, 96>}, {pipeline_mode = #tpu.pipeline_mode<synchronous>, transform_indices = @transform_3, window_bounds = array<i64: 64, 3>}]} {
    %c0 = arith.constant 0 : index
    %c0_0 = arith.constant 0 : index
    %0 = vector.load %arg3[%c0, %c0_0] : memref<112x96xf32, #tpu.memory_space<vmem>>, vector<8x96xf32>
    %c8 = arith.constant 8 : index
    %c0_1 = arith.constant 0 : index
    %1 = vector.load %arg3[%c8, %c0_1] : memref<112x96xf32, #tpu.memory_space<vmem>>, vector<96x96xf32>
    %c104 = arith.constant 104 : index
    %c0_2 = arith.constant 0 : index
    %2 = vector.load %arg3[%c104, %c0_2] : memref<112x96xf32, #tpu.memory_space<vmem>>, vector<8x96xf32>
    %3 = vector.extract_strided_slice %2 {offsets = [0, 0], sizes = [1, 96], strides = [1, 1]} : vector<8x96xf32> to vector<1x96xf32>
    %4 = vector.extract_strided_slice %2 {offsets = [1, 0], sizes = [1, 96], strides = [1, 1]} : vector<8x96xf32> to vector<1x96xf32>
    %5 = vector.extract_strided_slice %2 {offsets = [2, 0], sizes = [1, 1], strides = [1, 1]} : vector<8x96xf32> to vector<1x1xf32>
    %c0_3 = arith.constant 0 : index
    %c0_4 = arith.constant 0 : index
    %6 = vector.load %arg1[%c0_3, %c0_4] : memref<8x8xf32, #tpu.memory_space<vmem>>, vector<8x8xf32>
    %cst = arith.constant dense<0.000000e+00> : vector<8x96xf32>
    %7 = tpu.matmul %6, %0, %cst {dimension_numbers = #tpu.dot_dimension_numbers<[1], [0], [0], [1], [0, 0, 1, 1], [], []>} : vector<8x8xf32>, vector<8x96xf32>, vector<8x96xf32> -> vector<8x96xf32>
    %cst_5 = arith.constant 0.000000e+00 : f32
    %8 = vector.broadcast %cst_5 : f32 to vector<8x96xf32>
    %9 = arith.maximumf %7, %8 : vector<8x96xf32>
    %10 = vector.extract_strided_slice %9 {offsets = [0, 0], sizes = [8, 32], strides = [1, 1]} : vector<8x96xf32> to vector<8x32xf32>
    %11 = vector.extract_strided_slice %9 {offsets = [0, 32], sizes = [8, 32], strides = [1, 1]} : vector<8x96xf32> to vector<8x32xf32>
    %12 = vector.extract_strided_slice %9 {offsets = [0, 64], sizes = [8, 32], strides = [1, 1]} : vector<8x96xf32> to vector<8x32xf32>
    %c0_6 = arith.constant 0 : index
    %c0_7 = arith.constant 0 : index
    %13 = vector.load %arg2[%c0_6, %c0_7] : memref<8x32xf32, #tpu.memory_space<vmem>>, vector<8x32xf32>
    %14 = tpu.concatenate %10, %11, %12 in 1 : vector<8x32xf32>, vector<8x32xf32>, vector<8x32xf32> -> vector<8x96xf32>
    %c0_8 = arith.constant 0 : index
    %c0_9 = arith.constant 0 : index
    %15 = vector.load %arg5[%c0_8, %c0_9] : memref<64x96xf32, #tpu.memory_space<vmem>>, vector<8x96xf32>
    tpu.vector_store %arg5[%c0_8, %c0_9], %14 {strides = array<i32>} : memref<64x96xf32, #tpu.memory_space<vmem>>, vector<8x96xf32>,
    %16 = arith.mulf %13, %11 : vector<8x32xf32>
    %17 = arith.mulf %16, %10 : vector<8x32xf32>
    %cst_10 = arith.constant 5.000000e-01 : f32
    %18 = vector.broadcast %cst_10 : f32 to vector<8x32xf32>
    %19 = arith.mulf %18, %16 : vector<8x32xf32>
    %cst_11 = arith.constant 1.250000e-01 : f32
    %20 = vector.broadcast %cst_11 : f32 to vector<8x32xf32>
    %21 = arith.mulf %20, %17 : vector<8x32xf32>
    %22 = arith.subf %10, %21 : vector<8x32xf32>
    %23 = arith.subf %17, %19 : vector<8x32xf32>
    %cst_12 = arith.constant 1.250000e-01 : f32
    %24 = vector.broadcast %cst_12 : f32 to vector<8x32xf32>
    %25 = arith.mulf %24, %23 : vector<8x32xf32>
    %26 = arith.addf %11, %25 : vector<8x32xf32>
    %cst_13 = arith.constant 1.250000e-01 : f32
    %27 = vector.broadcast %cst_13 : f32 to vector<8x32xf32>
    %28 = arith.mulf %27, %19 : vector<8x32xf32>
    %29 = arith.addf %12, %28 : vector<8x32xf32>
    %30 = tpu.concatenate %22, %26, %29 in 1 : vector<8x32xf32>, vector<8x32xf32>, vector<8x32xf32> -> vector<8x96xf32>
    %c8_14 = arith.constant 8 : index
    %c0_15 = arith.constant 0 : index
    %31 = vector.load %arg5[%c8_14, %c0_15] : memref<64x96xf32, #tpu.memory_space<vmem>>, vector<8x96xf32>
    tpu.vector_store %arg5[%c8_14, %c0_15], %30 {strides = array<i32>} : memref<64x96xf32, #tpu.memory_space<vmem>>, vector<8x96xf32>,
    %32 = arith.mulf %13, %26 : vector<8x32xf32>
    %33 = arith.mulf %32, %22 : vector<8x32xf32>
    %cst_16 = arith.constant 5.000000e-01 : f32
    %34 = vector.broadcast %cst_16 : f32 to vector<8x32xf32>
    %35 = arith.mulf %34, %32 : vector<8x32xf32>
    %cst_17 = arith.constant 1.250000e-01 : f32
    %36 = vector.broadcast %cst_17 : f32 to vector<8x32xf32>
    %37 = arith.mulf %36, %33 : vector<8x32xf32>
    %38 = arith.subf %22, %37 : vector<8x32xf32>
    %39 = arith.subf %33, %35 : vector<8x32xf32>
    %cst_18 = arith.constant 1.250000e-01 : f32
    %40 = vector.broadcast %cst_18 : f32 to vector<8x32xf32>
    %41 = arith.mulf %40, %39 : vector<8x32xf32>
    %42 = arith.addf %26, %41 : vector<8x32xf32>
    %cst_19 = arith.constant 1.250000e-01 : f32
    %43 = vector.broadcast %cst_19 : f32 to vector<8x32xf32>
    %44 = arith.mulf %43, %35 : vector<8x32xf32>
    %45 = arith.addf %29, %44 : vector<8x32xf32>
    %46 = tpu.concatenate %38, %42, %45 in 1 : vector<8x32xf32>, vector<8x32xf32>, vector<8x32xf32> -> vector<8x96xf32>
    %c16 = arith.constant 16 : index
    %c0_20 = arith.constant 0 : index
    %47 = vector.load %arg5[%c16, %c0_20] : memref<64x96xf32, #tpu.memory_space<vmem>>, vector<8x96xf32>
    tpu.vector_store %arg5[%c16, %c0_20], %46 {strides = array<i32>} : memref<64x96xf32, #tpu.memory_space<vmem>>, vector<8x96xf32>,
    %48 = arith.mulf %13, %42 : vector<8x32xf32>
    %49 = arith.mulf %48, %38 : vector<8x32xf32>
    %cst_21 = arith.constant 5.000000e-01 : f32
    %50 = vector.broadcast %cst_21 : f32 to vector<8x32xf32>
    %51 = arith.mulf %50, %48 : vector<8x32xf32>
    %cst_22 = arith.constant 1.250000e-01 : f32
    %52 = vector.broadcast %cst_22 : f32 to vector<8x32xf32>
    %53 = arith.mulf %52, %49 : vector<8x32xf32>
    %54 = arith.subf %38, %53 : vector<8x32xf32>
    %55 = arith.subf %49, %51 : vector<8x32xf32>
    %cst_23 = arith.constant 1.250000e-01 : f32
    %56 = vector.broadcast %cst_23 : f32 to vector<8x32xf32>
    %57 = arith.mulf %56, %55 : vector<8x32xf32>
    %58 = arith.addf %42, %57 : vector<8x32xf32>
    %cst_24 = arith.constant 1.250000e-01 : f32
    %59 = vector.broadcast %cst_24 : f32 to vector<8x32xf32>
    %60 = arith.mulf %59, %51 : vector<8x32xf32>
    %61 = arith.addf %45, %60 : vector<8x32xf32>
    %62 = tpu.concatenate %54, %58, %61 in 1 : vector<8x32xf32>, vector<8x32xf32>, vector<8x32xf32> -> vector<8x96xf32>
    %c24 = arith.constant 24 : index
    %c0_25 = arith.constant 0 : index
    %63 = vector.load %arg5[%c24, %c0_25] : memref<64x96xf32, #tpu.memory_space<vmem>>, vector<8x96xf32>
    tpu.vector_store %arg5[%c24, %c0_25], %62 {strides = array<i32>} : memref<64x96xf32, #tpu.memory_space<vmem>>, vector<8x96xf32>,
    %64 = arith.mulf %13, %58 : vector<8x32xf32>
    %65 = arith.mulf %64, %54 : vector<8x32xf32>
    %cst_26 = arith.constant 5.000000e-01 : f32
    %66 = vector.broadcast %cst_26 : f32 to vector<8x32xf32>
    %67 = arith.mulf %66, %64 : vector<8x32xf32>
    %cst_27 = arith.constant 1.250000e-01 : f32
    %68 = vector.broadcast %cst_27 : f32 to vector<8x32xf32>
    %69 = arith.mulf %68, %65 : vector<8x32xf32>
    %70 = arith.subf %54, %69 : vector<8x32xf32>
    %71 = arith.subf %65, %67 : vector<8x32xf32>
    %cst_28 = arith.constant 1.250000e-01 : f32
    %72 = vector.broadcast %cst_28 : f32 to vector<8x32xf32>
    %73 = arith.mulf %72, %71 : vector<8x32xf32>
    %74 = arith.addf %58, %73 : vector<8x32xf32>
    %cst_29 = arith.constant 1.250000e-01 : f32
    %75 = vector.broadcast %cst_29 : f32 to vector<8x32xf32>
    %76 = arith.mulf %75, %67 : vector<8x32xf32>
    %77 = arith.addf %61, %76 : vector<8x32xf32>
    %78 = tpu.concatenate %70, %74, %77 in 1 : vector<8x32xf32>, vector<8x32xf32>, vector<8x32xf32> -> vector<8x96xf32>
    %c32 = arith.constant 32 : index
    %c0_30 = arith.constant 0 : index
    %79 = vector.load %arg5[%c32, %c0_30] : memref<64x96xf32, #tpu.memory_space<vmem>>, vector<8x96xf32>
    tpu.vector_store %arg5[%c32, %c0_30], %78 {strides = array<i32>} : memref<64x96xf32, #tpu.memory_space<vmem>>, vector<8x96xf32>,
    %80 = arith.mulf %13, %74 : vector<8x32xf32>
    %81 = arith.mulf %80, %70 : vector<8x32xf32>
    %cst_31 = arith.constant 5.000000e-01 : f32
    %82 = vector.broadcast %cst_31 : f32 to vector<8x32xf32>
    %83 = arith.mulf %82, %80 : vector<8x32xf32>
    %cst_32 = arith.constant 1.250000e-01 : f32
    %84 = vector.broadcast %cst_32 : f32 to vector<8x32xf32>
    %85 = arith.mulf %84, %81 : vector<8x32xf32>
    %86 = arith.subf %70, %85 : vector<8x32xf32>
    %87 = arith.subf %81, %83 : vector<8x32xf32>
    %cst_33 = arith.constant 1.250000e-01 : f32
    %88 = vector.broadcast %cst_33 : f32 to vector<8x32xf32>
    %89 = arith.mulf %88, %87 : vector<8x32xf32>
    %90 = arith.addf %74, %89 : vector<8x32xf32>
    %cst_34 = arith.constant 1.250000e-01 : f32
    %91 = vector.broadcast %cst_34 : f32 to vector<8x32xf32>
    %92 = arith.mulf %91, %83 : vector<8x32xf32>
    %93 = arith.addf %77, %92 : vector<8x32xf32>
    %94 = tpu.concatenate %86, %90, %93 in 1 : vector<8x32xf32>, vector<8x32xf32>, vector<8x32xf32> -> vector<8x96xf32>
    %c40 = arith.constant 40 : index
    %c0_35 = arith.constant 0 : index
    %95 = vector.load %arg5[%c40, %c0_35] : memref<64x96xf32, #tpu.memory_space<vmem>>, vector<8x96xf32>
    tpu.vector_store %arg5[%c40, %c0_35], %94 {strides = array<i32>} : memref<64x96xf32, #tpu.memory_space<vmem>>, vector<8x96xf32>,
    %96 = arith.mulf %13, %90 : vector<8x32xf32>
    %97 = arith.mulf %96, %86 : vector<8x32xf32>
    %cst_36 = arith.constant 5.000000e-01 : f32
    %98 = vector.broadcast %cst_36 : f32 to vector<8x32xf32>
    %99 = arith.mulf %98, %96 : vector<8x32xf32>
    %cst_37 = arith.constant 1.250000e-01 : f32
    %100 = vector.broadcast %cst_37 : f32 to vector<8x32xf32>
    %101 = arith.mulf %100, %97 : vector<8x32xf32>
    %102 = arith.subf %86, %101 : vector<8x32xf32>
    %103 = arith.subf %97, %99 : vector<8x32xf32>
    %cst_38 = arith.constant 1.250000e-01 : f32
    %104 = vector.broadcast %cst_38 : f32 to vector<8x32xf32>
    %105 = arith.mulf %104, %103 : vector<8x32xf32>
    %106 = arith.addf %90, %105 : vector<8x32xf32>
    %cst_39 = arith.constant 1.250000e-01 : f32
    %107 = vector.broadcast %cst_39 : f32 to vector<8x32xf32>
    %108 = arith.mulf %107, %99 : vector<8x32xf32>
    %109 = arith.addf %93, %108 : vector<8x32xf32>
    %110 = tpu.concatenate %102, %106, %109 in 1 : vector<8x32xf32>, vector<8x32xf32>, vector<8x32xf32> -> vector<8x96xf32>
    %c48 = arith.constant 48 : index
    %c0_40 = arith.constant 0 : index
    %111 = vector.load %arg5[%c48, %c0_40] : memref<64x96xf32, #tpu.memory_space<vmem>>, vector<8x96xf32>
    tpu.vector_store %arg5[%c48, %c0_40], %110 {strides = array<i32>} : memref<64x96xf32, #tpu.memory_space<vmem>>, vector<8x96xf32>,
    %112 = arith.mulf %13, %106 : vector<8x32xf32>
    %113 = arith.mulf %112, %102 : vector<8x32xf32>
    %cst_41 = arith.constant 5.000000e-01 : f32
    %114 = vector.broadcast %cst_41 : f32 to vector<8x32xf32>
    %115 = arith.mulf %114, %112 : vector<8x32xf32>
    %cst_42 = arith.constant 1.250000e-01 : f32
    %116 = vector.broadcast %cst_42 : f32 to vector<8x32xf32>
    %117 = arith.mulf %116, %113 : vector<8x32xf32>
    %118 = arith.subf %102, %117 : vector<8x32xf32>
    %119 = arith.subf %113, %115 : vector<8x32xf32>
    %cst_43 = arith.constant 1.250000e-01 : f32
    %120 = vector.broadcast %cst_43 : f32 to vector<8x32xf32>
    %121 = arith.mulf %120, %119 : vector<8x32xf32>
    %122 = arith.addf %106, %121 : vector<8x32xf32>
    %cst_44 = arith.constant 1.250000e-01 : f32
    %123 = vector.broadcast %cst_44 : f32 to vector<8x32xf32>
    %124 = arith.mulf %123, %115 : vector<8x32xf32>
    %125 = arith.addf %109, %124 : vector<8x32xf32>
    %126 = tpu.concatenate %118, %122, %125 in 1 : vector<8x32xf32>, vector<8x32xf32>, vector<8x32xf32> -> vector<8x96xf32>
    %c56 = arith.constant 56 : index
    %c0_45 = arith.constant 0 : index
    %127 = vector.load %arg5[%c56, %c0_45] : memref<64x96xf32, #tpu.memory_space<vmem>>, vector<8x96xf32>
    tpu.vector_store %arg5[%c56, %c0_45], %126 {strides = array<i32>} : memref<64x96xf32, #tpu.memory_space<vmem>>, vector<8x96xf32>,
    %c0_46 = arith.constant 0 : index
    %c0_47 = arith.constant 0 : index
    %128 = vector.load %arg5[%c0_46, %c0_47] : memref<64x96xf32, #tpu.memory_space<vmem>>, vector<64x96xf32>
    %cst_48 = arith.constant dense<0.000000e+00> : vector<64x96xf32>
    %129 = tpu.matmul %128, %1, %cst_48 {dimension_numbers = #tpu.dot_dimension_numbers<[1], [0], [0], [1], [0, 0, 1, 1], [], []>} : vector<64x96xf32>, vector<96x96xf32>, vector<64x96xf32> -> vector<64x96xf32>
    %130 = vector.broadcast %3 : vector<1x96xf32> to vector<64x96xf32>
    %131 = arith.addf %129, %130 : vector<64x96xf32>
    %cst_49 = arith.constant 0.000000e+00 : f32
    %132 = vector.broadcast %cst_49 : f32 to vector<64x96xf32>
    %133 = arith.maximumf %131, %132 : vector<64x96xf32>
    %134 = vector.broadcast %4 : vector<1x96xf32> to vector<64x96xf32>
    %135 = arith.mulf %133, %134 : vector<64x96xf32>
    %136 = vector.extract_strided_slice %135 {offsets = [0, 0], sizes = [64, 4], strides = [1, 1]} : vector<64x96xf32> to vector<64x4xf32>
    %cst_50 = arith.constant dense<0.000000e+00> : vector<64xf32>
    %137 = vector.multi_reduction <add>, %136, %cst_50 [1] : vector<64x4xf32> to vector<64xf32>
    %138 = vector.shape_cast %137 : vector<64xf32> to vector<64x1xf32>
    %139 = vector.broadcast %5 : vector<1x1xf32> to vector<64x1xf32>
    %140 = arith.addf %138, %139 : vector<64x1xf32>
    %141 = vector.extract_strided_slice %135 {offsets = [0, 4], sizes = [64, 4], strides = [1, 1]} : vector<64x96xf32> to vector<64x4xf32>
    %cst_51 = arith.constant dense<0.000000e+00> : vector<64xf32>
    %142 = vector.multi_reduction <add>, %141, %cst_51 [1] : vector<64x4xf32> to vector<64xf32>
    %143 = vector.shape_cast %142 : vector<64xf32> to vector<64x1xf32>
    %144 = vector.broadcast %5 : vector<1x1xf32> to vector<64x1xf32>
    %145 = arith.addf %143, %144 : vector<64x1xf32>
    %146 = vector.extract_strided_slice %135 {offsets = [0, 8], sizes = [64, 4], strides = [1, 1]} : vector<64x96xf32> to vector<64x4xf32>
    %cst_52 = arith.constant dense<0.000000e+00> : vector<64xf32>
    %147 = vector.multi_reduction <add>, %146, %cst_52 [1] : vector<64x4xf32> to vector<64xf32>
    %148 = vector.shape_cast %147 : vector<64xf32> to vector<64x1xf32>
    %149 = vector.broadcast %5 : vector<1x1xf32> to vector<64x1xf32>
    %150 = arith.addf %148, %149 : vector<64x1xf32>
    %151 = arith.maximumf %140, %145 : vector<64x1xf32>
    %152 = arith.maximumf %151, %150 : vector<64x1xf32>
    %153 = arith.subf %140, %152 : vector<64x1xf32>
    %154 = math.exp %153 : vector<64x1xf32>
    %155 = arith.subf %145, %152 : vector<64x1xf32>
    %156 = math.exp %155 : vector<64x1xf32>
    %157 = arith.subf %150, %152 : vector<64x1xf32>
    %158 = math.exp %157 : vector<64x1xf32>
    %159 = arith.addf %154, %156 : vector<64x1xf32>
    %160 = arith.addf %159, %158 : vector<64x1xf32>
    %161 = tpu.concatenate %154, %156, %158 in 1 : vector<64x1xf32>, vector<64x1xf32>, vector<64x1xf32> -> vector<64x3xf32>
    %162 = vector.broadcast %160 : vector<64x1xf32> to vector<64x3xf32>
    %163 = arith.divf %161, %162 : vector<64x3xf32>
    %c0_53 = arith.constant 0 : index
    %c0_54 = arith.constant 0 : index
    %164 = vector.load %arg4[%c0_53, %c0_54] : memref<64x3xf32, #tpu.memory_space<vmem>>, vector<64x3xf32>
    tpu.vector_store %arg4[%c0_53, %c0_54], %163 {strides = array<i32>} : memref<64x3xf32, #tpu.memory_space<vmem>>, vector<64x3xf32>,
    return
  }
  func.func @transform_0(%arg0: i32) -> (i32, i32) {
    %c0_i32 = arith.constant 0 : i32
    %c0_i32_0 = arith.constant 0 : i32
    %c0_i32_1 = arith.constant 0 : i32
    return %c0_i32, %c0_i32_0 : i32, i32
  }
  func.func @transform_1(%arg0: i32) -> (i32, i32) {
    %c0_i32 = arith.constant 0 : i32
    %c0_i32_0 = arith.constant 0 : i32
    %c0_i32_1 = arith.constant 0 : i32
    return %c0_i32, %c0_i32_0 : i32, i32
  }
  func.func @transform_2(%arg0: i32) -> (i32, i32) {
    %c0_i32 = arith.constant 0 : i32
    %c0_i32_0 = arith.constant 0 : i32
    %c0_i32_1 = arith.constant 0 : i32
    return %c0_i32, %c0_i32_0 : i32, i32
  }
  func.func @transform_3(%arg0: i32) -> (i32, i32) {
    %c0_i32 = arith.constant 0 : i32
    %c0_i32_0 = arith.constant 0 : i32
    %c0_i32_1 = arith.constant 0 : i32
    return %c0_i32, %c0_i32_0 : i32, i32
  }
}

</mosaic_0001>

<bundles_post_ra>
// kernel: tpu_custom_call.1
= control target key start
LH: loop header
LB: loop body
LE: loop exit
PB: predicated region body
PF: predicated region fallthrough
CT: control target
= control target key end

     0   :  { %vm29_vm0 = vcmask 64512   ;;  %v1029_v0 = vmov 0.0   ;;  %vm1030_vm1 = vmmov 0   ;;  %vm105_vm2 = vcmask 785408   ;;  %s1031_s16 = smov 96   ;;  %s1033_s15 = smov 64   ;;  %s1442_s2 = inlined_call_operand.vmem [shape: f32[112,96], index: 2, kind: input, shape index: {}]   ;;  %s1443_s0 = inlined_call_operand.vmem [shape: f32[8,8], index: 0, kind: input, shape index: {}]   ;;  %s1444_s1 = inlined_call_operand.vmem [shape: f32[8,32], index: 1, kind: input, shape index: {}]   ;;  %s1445_s3 = inlined_call_operand.vmem [shape: f32[64,3], index: 3, kind: output, shape index: {}]  }
   0x1   :  { %888 = vmatprep.subr.mxu0 %v1029_v0  ;;  %v14_v1 = vld [vmem:[%s1442_s2] sm:$0xff]  ;;  %890 = vmatprep.mubr.msk.f32.mxu0 %vm1030_vm1, %v1029_v0  ;;  %v25_v57 = vld [vmem:[%s1442_s2 + $0x58] sm:$0xff]  ;;  %v24_v58 = vld [vmem:[%s1442_s2 + $0x50] sm:$0xff]  ;;  %vm129_vm3 = vcmask 261120   ;;  %vm131_vm4 = vcmask 523264   ;;  %s1034_s18 = smov 124  }
   0x2   :  { %v28_v2 = vld [vmem:[%s1443_s0] sm:$0xff]  ;;  %889 = vmatpush3.msra.mxu0 %v14_v1  ;;  %s1032_s0 = smov 32   ;;  %v23_v59 = vld [vmem:[%s1442_s2 + $0x48] sm:$0xff]  ;;  %v21_v61 = vld [vmem:[%s1442_s2 + $0x38] sm:$0xff]  ;;  %vm445_vm5 = vcmask 31744   ;;  %vm770_vm6 = vcmask 7168  }
   0x3   :  { %891 = vmatmul.mubr.msk.f32.vlgmr.msra.gmra.mxu0 %vm29_vm0, %v28_v2  ;;  %v1075_v7 = vld [vmem:[%s1444_s1] sm:$0xff]  ;;  %v20_v63 = vld [vmem:[%s1442_s2 + $0x30] sm:$0xff]  ;;  %v19_v1 = vld [vmem:[%s1442_s2 + $0x28] sm:$0xff]  ;;  %s1038_s1 = smov 2   ;;  %vm779_vm7 = vcmask 15360   ;;  %vm844_vm8 = vcmask 23552  }
   0x4   :  { %v26_v56 = vld [vmem:[%s1442_s2 + $0x60] sm:$0xff] }
   0x5   :  { %893 = vmatprep.subr.mxu0 %v26_v56  ;;  %929 = vmatprep.subr.mxu1 %v26_v56  ;;  %v22_v60 = vld [vmem:[%s1442_s2 + $0x40] sm:$0xff] }
   0x6   :  { %894 = vmatpush3.msra.mxu0 %v26_v56  ;;  %941 = vmatpush3.msra.mxu1 %v26_v56 }
   0x7   :  { %895 = vmatprep.subr.mxu0 %v25_v57  ;;  %930 = vmatprep.subr.mxu1 %v25_v57 }
   0x8   :  { %896 = vmatpush3.msra.mxu0 %v25_v57  ;;  %942 = vmatpush3.msra.mxu1 %v25_v57 }
   0x9   :  { %897 = vmatprep.subr.mxu0 %v24_v58  ;;  %931 = vmatprep.subr.mxu1 %v24_v58 }
   0xa   :  { %898 = vmatpush3.msra.mxu0 %v24_v58  ;;  %943 = vmatpush3.msra.mxu1 %v24_v58 }
   0xb   :  { %899 = vmatprep.subr.mxu0 %v23_v59  ;;  %932 = vmatprep.subr.mxu1 %v23_v59 }
   0xc   :  { %900 = vmatpush3.msra.mxu0 %v23_v59  ;;  %944 = vmatpush3.msra.mxu1 %v23_v59  ;;  %v292_v59 = vlaneseq }
   0xd   :  { %901 = vmatprep.subr.mxu0 %v22_v60  ;;  %933 = vmatprep.subr.mxu1 %v22_v60 }
   0xe   :  { %902 = vmatpush3.msra.mxu0 %v22_v60  ;;  %945 = vmatpush3.msra.mxu1 %v22_v60  ;;  %v1246_v60 = vshrl.u32 %v292_v59, 7 }
   0xf   :  { %903 = vmatprep.subr.mxu0 %v21_v61  ;;  %934 = vmatprep.subr.mxu1 %v21_v61 }
  0x10   :  { %904 = vmatpush3.msra.mxu0 %v21_v61  ;;  %946 = vmatpush3.msra.mxu1 %v21_v61  ;;  %v294_v61 = vsub.s32 0, %v1246_v60 }
  0x11   :  { %905 = vmatprep.subr.mxu0 %v20_v63  ;;  %935 = vmatprep.subr.mxu1 %v20_v63 }
  0x12   :  { %906 = vmatpush3.msra.mxu0 %v20_v63  ;;  %947 = vmatpush3.msra.mxu1 %v20_v63 }
  0x13   :  { %907 = vmatprep.subr.mxu0 %v19_v1  ;;  %936 = vmatprep.subr.mxu1 %v19_v1 }
  0x14   :  { %908 = vmatpush3.msra.mxu0 %v19_v1  ;;  %948 = vmatpush3.msra.mxu1 %v19_v1 }
  0xc3   :  { %v99_v3 = vpop.f32.mrf.mxu0 }
  0xc4   :  { %v1065_v4 = vmax.f32 %v99_v3, 0.0 }
  0xc5   :  { %v892_v5 = vpop.f32.mrf.mxu0 }
  0xc6   :  { %106 = vst.msk [vmem:[#allocation2] sm:$0xff] %vm105_vm2, %v1065_v4  ;;  %108 = vrot.lane.b32.xlu0 %v1065_v4, %s1031_s16  ;;  %v18_v5 = vld [vmem:[%s1442_s2 + $0x20] sm:$0xff] }
  0xc7   :  { %909 = vmatprep.subr.mxu0 %v18_v5  ;;  %937 = vmatprep.subr.mxu1 %v18_v5 }
  0xc8   :  { %910 = vmatpush3.msra.mxu0 %v18_v5  ;;  %949 = vmatpush3.msra.mxu1 %v18_v5 }
  0xcd   :  { %v284_v6 = vld [vmem:[#allocation2] sm:$0xff] }
  0xce   :  { %917 = vmatprep.mubr.msk.f32.mxu0 %vm105_vm2, %v284_v6 }
 0x138   :  { %v109_v8 = vpop.permute.xlu0 %108 }
 0x139   :  { %v111_v9 = vmul.f32 %v109_v8, %v1075_v7 }
 0x13b   :  { %v112_v10 = vmul.f32 %v111_v9, %v1065_v4  ;;  %v1079_v11 = vmul.f32 0.5, %v111_v9  ;;  %v17_v9 = vld [vmem:[%s1442_s2 + $0x18] sm:$0xff] }
 0x13c   :  { %911 = vmatprep.subr.mxu0 %v17_v9  ;;  %938 = vmatprep.subr.mxu1 %v17_v9 }
 0x13d   :  { %v116_v12 = vsub.f32 %v112_v10, %v1079_v11  ;;  %v114_v16 = vmul.f32 0.125, %v112_v10  ;;  %912 = vmatpush3.msra.mxu0 %v17_v9  ;;  %950 = vmatpush3.msra.mxu1 %v17_v9 }
 0x13f   :  { %v117_v13 = vmul.f32 0.125, %v116_v12  ;;  %v1089_v18 = vsub.f32 %v1065_v4, %v114_v16  ;;  %v16_v12 = vld [vmem:[%s1442_s2 + $0x10] sm:$0xff]  ;;  %v123_v16 = vmul.f32 0.125, %v1079_v11 }
 0x140   :  { %913 = vmatprep.subr.mxu0 %v16_v12  ;;  %939 = vmatprep.subr.mxu1 %v16_v12 }
 0x141   :  { %119 = vrot.lane.b32.xlu0 %v117_v13, %s1032_s0  ;;  %914 = vmatpush3.msra.mxu0 %v16_v12 }
 0x142   :  { %951 = vmatpush3.msra.mxu1 %v16_v12 }
 0x1b3   :  { %v120_v14 = vpop.permute.xlu0 %119 }
 0x1b4   :  { %v1084_v15 = vadd.f32 %v120_v14, %v1065_v4  ;;  %v15_v14 = vld [vmem:[%s1442_s2 + $0x8] sm:$0xff] }
 0x1b5   :  { %915 = vmatprep.subr.mxu0 %v15_v14  ;;  %940 = vmatprep.subr.mxu1 %v15_v14 }
 0x1b6   :  { %135 = vrot.lane.b32.xlu1 %v1084_v15, %s1031_s16  ;;  %916 = vmatpush3.msra.mxu0 %v15_v14 }
 0x1b7   :  { %952 = vmatpush3.msra.mxu1 %v15_v14 }
 0x228   :  { %v136_v17 = vpop.permute.xlu1 %135 }
 0x229   :  { %v138_v19 = vmul.f32 %v136_v17, %v1075_v7 }
 0x22b   :  { %v139_v20 = vmul.f32 %v138_v19, %v1089_v18  ;;  %v1093_v21 = vmul.f32 0.5, %v138_v19 }
 0x22d   :  { %v143_v22 = vsub.f32 %v139_v20, %v1093_v21  ;;  %v141_v26 = vmul.f32 0.125, %v139_v20 }
 0x22f   :  { %v144_v23 = vmul.f32 0.125, %v143_v22  ;;  %v1103_v28 = vsub.f32 %v1089_v18, %v141_v26  ;;  %v130_v26 = vsel %vm129_vm3, %v1089_v18, %v1084_v15 }
 0x231   :  { %146 = vrot.lane.b32.xlu1 %v144_v23, %s1032_s0 }
 0x2a3   :  { %v147_v24 = vpop.permute.xlu1 %146 }
 0x2a4   :  { %v1098_v25 = vadd.f32 %v147_v24, %v1084_v15  ;;  %v150_v24 = vmul.f32 0.125, %v1093_v21 }
 0x2a6   :  { %160 = vrot.lane.b32.xlu0 %v1098_v25, %s1031_s16 }
 0x318   :  { %v161_v27 = vpop.permute.xlu0 %160 }
 0x319   :  { %v163_v29 = vmul.f32 %v161_v27, %v1075_v7 }
 0x31b   :  { %v164_v30 = vmul.f32 %v163_v29, %v1103_v28  ;;  %v1107_v31 = vmul.f32 0.5, %v163_v29 }
 0x31d   :  { %v168_v32 = vsub.f32 %v164_v30, %v1107_v31  ;;  %v166_v36 = vmul.f32 0.125, %v164_v30  ;;  %v175_v17 = vmul.f32 0.125, %v1107_v31 }
 0x31f   :  { %v169_v33 = vmul.f32 0.125, %v168_v32  ;;  %v1117_v38 = vsub.f32 %v1103_v28, %v166_v36 }
 0x321   :  { %171 = vrot.lane.b32.xlu1 %v169_v33, %s1032_s0 }
 0x393   :  { %v172_v34 = vpop.permute.xlu1 %171 }
 0x394   :  { %v1112_v35 = vadd.f32 %v172_v34, %v1098_v25 }
 0x396   :  { %185 = vrot.lane.b32.xlu0 %v1112_v35, %s1031_s16 }
 0x408   :  { %v186_v37 = vpop.permute.xlu0 %185 }
 0x409   :  { %v188_v39 = vmul.f32 %v186_v37, %v1075_v7 }
 0x40b   :  { %v189_v40 = vmul.f32 %v188_v39, %v1117_v38  ;;  %v1121_v41 = vmul.f32 0.5, %v188_v39 }
 0x40d   :  { %v193_v42 = vsub.f32 %v189_v40, %v1121_v41  ;;  %v191_v46 = vmul.f32 0.125, %v189_v40  ;;  %v200_v29 = vmul.f32 0.125, %v1121_v41  ;;  %v156_v41 = vsel %vm129_vm3, %v1103_v28, %v1098_v25 }
 0x40f   :  { %v194_v43 = vmul.f32 0.125, %v193_v42  ;;  %v1131_v48 = vsub.f32 %v1117_v38, %v191_v46 }
 0x411   :  { %196 = vrot.lane.b32.xlu1 %v194_v43, %s1032_s0 }
 0x483   :  { %v197_v44 = vpop.permute.xlu1 %196 }
 0x484   :  { %v1126_v45 = vadd.f32 %v197_v44, %v1112_v35 }
 0x486   :  { %210 = vrot.lane.b32.xlu0 %v1126_v45, %s1031_s16  ;;  %v206_v25 = vsel %vm129_vm3, %v1131_v48, %v1126_v45 }
 0x4f8   :  { %v211_v47 = vpop.permute.xlu0 %210 }
 0x4f9   :  { %v213_v49 = vmul.f32 %v211_v47, %v1075_v7 }
 0x4fb   :  { %v214_v50 = vmul.f32 %v213_v49, %v1131_v48  ;;  %v1135_v51 = vmul.f32 0.5, %v213_v49 }
 0x4fd   :  { %v218_v52 = vsub.f32 %v214_v50, %v1135_v51  ;;  %v216_v62 = vmul.f32 0.125, %v214_v50  ;;  %v225_v19 = vmul.f32 0.125, %v1135_v51 }
 0x4ff   :  { %v219_v53 = vmul.f32 0.125, %v218_v52  ;;  %v1169_v2 = vsub.f32 %v1131_v48, %v216_v62  ;;  %v1252_v62 = vld [vmem:[%s1442_s2 + $0x68] sm:$0xff]  ;;  %s1035_s2 = smov 120  }
 0x500   :  { %v295_v63 = vrot.slane %v1252_v62, %v294_v61 }
 0x501   :  { %221 = vrot.lane.b32.xlu1 %v219_v53, %s1032_s0 }
 0x573   :  { %v222_v54 = vpop.permute.xlu1 %221 }
 0x574   :  { %v1140_v55 = vadd.f32 %v222_v54, %v1126_v45 }
 0x576   :  { %235 = vrot.lane.b32.xlu0 %v1140_v55, %s1031_s16 }
 0x5e8   :  { %v236_v0 = vpop.permute.xlu0 %235 }
 0x5e9   :  { %v238_v3 = vmul.f32 %v236_v0, %v1075_v7  ;;  %v435_v0 = vsub.s32 1, %v1246_v60 }
 0x5eb   :  { %v239_v6 = vmul.f32 %v238_v3, %v1169_v2  ;;  %v240_v8 = vmul.f32 0.5, %v238_v3  ;;  %v436_v3 = vrot.slane %v1252_v62, %v435_v0 }
 0x5ed   :  { %v243_v10 = vsub.f32 %v239_v6, %v240_v8  ;;  %v250_v30 = vmul.f32 0.125, %v240_v8  ;;  %v241_v21 = vmul.f32 0.125, %v239_v6 }
 0x5ef   :  { %v244_v13 = vmul.f32 0.125, %v243_v10  ;;  %v1210_v15 = vsub.f32 %v1169_v2, %v241_v21 }
 0x5f1   :  { %246 = vrot.lane.b32.xlu1 %v244_v13, %s1032_s0 }
 0x5f5   :  { %125 = vrot.lane.b32.xlu1 %v123_v16, %s1033_s15 }
 0x5f9   :  { %177 = vrot.lane.b32.xlu1 %v175_v17, %s1033_s15 }
 0x5fd   :  { %227 = vrot.lane.b32.xlu1 %v225_v19, %s1033_s15 }
 0x663   :  { %v247_v20 = vpop.permute.xlu1 %246 }
 0x664   :  { %v1193_v22 = vadd.f32 %v247_v20, %v1140_v55 }
 0x666   :  { %260 = vrot.lane.b32.xlu0 %v1193_v22, %s1031_s16  ;;  %v256_v45 = vsel %vm129_vm3, %v1210_v15, %v1193_v22 }
 0x667   :  { %v126_v11 = vpop.permute.xlu1 %125 }
 0x668   :  { %v128_v23 = vadd.f32 %v126_v11, %v1065_v4 }
 0x66a   :  { %v132_v27 = vsel %vm131_vm4, %v130_v26, %v128_v23  ;;  %152 = vrot.lane.b32.xlu0 %v150_v24, %s1033_s15 }
 0x66b   :  { %133 = vst.msk [vmem:[#allocation2 + $0x8] sm:$0xff] %vm105_vm2, %v132_v27  ;;  %v178_v34 = vpop.permute.xlu1 %177 }
 0x66e   :  { %202 = vrot.lane.b32.xlu0 %v200_v29, %s1033_s15 }
 0x66f   :  { %v228_v28 = vpop.permute.xlu1 %227 }
 0x672   :  { %252 = vrot.lane.b32.xlu0 %v250_v30, %s1033_s15  ;;  %v285_v4 = vld [vmem:[#allocation2 + $0x8] sm:$0xff] }
 0x673   :  { %918 = vmatmul.mubr.msk.f32.vlgmr.msra.gmra.mxu0 %vm105_vm2, %v285_v4 }
 0x6d8   :  { %v261_v31 = vpop.permute.xlu0 %260 }
 0x6d9   :  { %v263_v18 = vmul.f32 %v261_v31, %v1075_v7  ;;  %v181_v7 = vsel %vm129_vm3, %v1117_v38, %v1112_v35  ;;  %v231_v35 = vsel %vm129_vm3, %v1169_v2, %v1140_v55 }
 0x6db   :  { %v264_v32 = vmul.f32 %v263_v18, %v1210_v15  ;;  %v265_v33 = vmul.f32 0.5, %v263_v18 }
 0x6dc   :  { %v153_v36 = vpop.permute.xlu0 %152 }
 0x6dd   :  { %v155_v37 = vadd.f32 %v153_v36, %v128_v23  ;;  %v275_v39 = vmul.f32 0.125, %v265_v33  ;;  %v268_v40 = vsub.f32 %v264_v32, %v265_v33  ;;  %v266_v13 = vmul.f32 0.125, %v264_v32 }
 0x6df   :  { %v157_v42 = vsel %vm131_vm4, %v156_v41, %v155_v37  ;;  %277 = vrot.lane.b32.xlu0 %v275_v39, %s1033_s15  ;;  %v180_v43 = vadd.f32 %v178_v34, %v155_v37  ;;  %v269_v44 = vmul.f32 0.125, %v268_v40  ;;  %v267_v17 = vsub.f32 %v1210_v15, %v266_v13 }
 0x6e0   :  { %158 = vst.msk [vmem:[#allocation2 + $0x10] sm:$0xff] %vm105_vm2, %v157_v42  ;;  %v203_v46 = vpop.permute.xlu0 %202 }
 0x6e1   :  { %v182_v47 = vsel %vm131_vm4, %v181_v7, %v180_v43  ;;  %v205_v49 = vadd.f32 %v203_v46, %v180_v43  ;;  %271 = vrot.lane.b32.xlu1 %v269_v44, %s1032_s0  ;;  %s1037_s0 = smov 1  }
 0x6e2   :  { %183 = vst.msk [vmem:[#allocation2 + $0x18] sm:$0xff] %vm105_vm2, %v182_v47 }
 0x6e3   :  { %v207_v50 = vsel %vm131_vm4, %v206_v25, %v205_v49  ;;  %v230_v51 = vadd.f32 %v228_v28, %v205_v49 }
 0x6e4   :  { %208 = vst.msk [vmem:[#allocation2 + $0x20] sm:$0xff] %vm105_vm2, %v207_v50  ;;  %v253_v38 = vpop.permute.xlu0 %252 }
 0x6e5   :  { %v232_v52 = vsel %vm131_vm4, %v231_v35, %v230_v51  ;;  %v255_v53 = vadd.f32 %v253_v38, %v230_v51 }
 0x6e6   :  { %233 = vst.msk [vmem:[#allocation2 + $0x28] sm:$0xff] %vm105_vm2, %v232_v52 }
 0x6e7   :  { %v257_v48 = vsel %vm131_vm4, %v256_v45, %v255_v53  ;;  %v286_v54 = vld [vmem:[#allocation2 + $0x10] sm:$0xff] }
 0x6e8   :  { %258 = vst.msk [vmem:[#allocation2 + $0x30] sm:$0xff] %vm105_vm2, %v257_v48  ;;  %920 = vmatprep.mubr.msk.f32.mxu1 %vm105_vm2, %v286_v54 }
 0x6e9   :  { %v287_v55 = vld [vmem:[#allocation2 + $0x18] sm:$0xff] }
 0x6ea   :  { %921 = vmatmul.mubr.msk.f32.vlgmr.msra.gmra.mxu1 %vm105_vm2, %v287_v55 }
 0x6eb   :  { %v288_v56 = vld [vmem:[#allocation2 + $0x20] sm:$0xff] }
 0x6ec   :  { %923 = vmatprep.mubr.msk.f32.mxu1 %vm105_vm2, %v288_v56 }
 0x6ed   :  { %v289_v57 = vld [vmem:[#allocation2 + $0x28] sm:$0xff] }
 0x6ee   :  { %924 = vmatmul.mubr.msk.f32.gmra.mxu1 %vm105_vm2, %v289_v57 }
 0x6ef   :  { %v290_v58 = vld [vmem:[#allocation2 + $0x30] sm:$0xff] }
 0x6f0   :  { %926 = vmatprep.mubr.msk.f32.mxu1 %vm105_vm2, %v290_v58 }
 0x733   :  { %v919_v1 = vpop.f32.mrf.mxu0 }
 0x734   :  { %v392_v2 = vadd.f32 %v919_v1, %v295_v63 }
 0x735   :  { %v386_v5 = vpop.f32.mrf.mxu0 }
 0x736   :  { %v426_v6 = vmax.f32 %v392_v2, 0.0  ;;  %v387_v8 = vadd.f32 %v386_v5, %v295_v63 }
 0x738   :  { %v438_v9 = vmul.f32 %v436_v3, %v426_v6  ;;  %v425_v10 = vmax.f32 %v387_v8, 0.0 }
 0x73a   :  { %v437_v12 = vmul.f32 %v436_v3, %v425_v10  ;;  %492 = vrot.lane.b32.xlu0 %v438_v9, %s1034_s18  ;;  %v449_v49 = vsel %vm445_vm5, %v438_v9, 0.0 }
 0x73c   :  { %490 = vrot.lane.b32.xlu1 %v437_v12, %s1034_s18  ;;  %v446_v51 = vsel %vm445_vm5, %v437_v12, 0.0 }
 0x751   :  { %v278_v14 = vpop.permute.xlu0 %277 }
 0x752   :  { %v280_v20 = vadd.f32 %v278_v14, %v255_v53 }
 0x753   :  { %v272_v16 = vpop.permute.xlu1 %271 }
 0x754   :  { %v274_v19 = vadd.f32 %v272_v16, %v1193_v22 }
 0x756   :  { %v281_v11 = vsel %vm129_vm3, %v267_v17, %v274_v19 }
 0x757   :  { %v282_v23 = vsel %vm131_vm4, %v281_v11, %v280_v20 }
 0x758   :  { %283 = vst.msk [vmem:[#allocation2 + $0x38] sm:$0xff] %vm105_vm2, %v282_v23 }
 0x75f   :  { %v291_v24 = vld [vmem:[#allocation2 + $0x38] sm:$0xff] }
 0x760   :  { %927 = vmatmul.mubr.msk.f32.gmra.mxu1 %vm105_vm2, %v291_v24 }
 0x7aa   :  { %v922_v26 = vpop.f32.mrf.mxu1 }
 0x7ab   :  { %v402_v27 = vadd.f32 %v922_v26, %v295_v63 }
 0x7ac   :  { %v396_v29 = vpop.f32.mrf.mxu1  ;;  %v493_v53 = vpop.permute.xlu0 %492 }
 0x7ad   :  { %v428_v30 = vmax.f32 %v402_v27, 0.0  ;;  %v397_v4 = vadd.f32 %v396_v29, %v295_v63  ;;  %v1036_v29 = vmov 0  }
 0x7ae   :  { %v925_v21 = vpop.f32.mrf.mxu1  ;;  %v491_v25 = vpop.permute.xlu1 %490  ;;  %964 = vset.pattern.permute.xlu0 %v1036_v29  ;;  %963 = vset.pattern.permute.xlu1 %v1036_v29 }
 0x7af   :  { %v440_v31 = vmul.f32 %v436_v3, %v428_v30  ;;  %v427_v15 = vmax.f32 %v397_v4, 0.0  ;;  %v412_v18 = vadd.f32 %v925_v21, %v295_v63  ;;  %v514_v45 = vsel %vm445_vm5, %v491_v25, 0.0 }
 0x7b0   :  { %v406_v22 = vpop.f32.mrf.mxu1 }
 0x7b1   :  { %v439_v32 = vmul.f32 %v436_v3, %v427_v15  ;;  %v430_v33 = vmax.f32 %v412_v18, 0.0  ;;  %v407_v34 = vadd.f32 %v406_v22, %v295_v63  ;;  %496 = vrot.lane.b32.xlu0 %v440_v31, %s1034_s18  ;;  %v455_v52 = vsel %vm445_vm5, %v440_v31, 0.0 }
 0x7b2   :  { %v472_v22 = vsub.s32 2, %v1246_v60 }
 0x7b3   :  { %v442_v36 = vmul.f32 %v436_v3, %v430_v33  ;;  %v429_v37 = vmax.f32 %v407_v34, 0.0  ;;  %494 = vrot.lane.b32.xlu1 %v439_v32, %s1034_s18  ;;  %v452_v28 = vsel %vm445_vm5, %v439_v32, 0.0 }
 0x7b4   :  { %v1297_v34 = vrot.slane %v1252_v62, %v472_v22 }
 0x7b5   :  { %v441_v39 = vmul.f32 %v436_v3, %v429_v37  ;;  %500 = vrot.lane.b32.xlu0 %v442_v36, %s1034_s18  ;;  %v461_v48 = vsel %vm445_vm5, %v442_v36, 0.0 }
 0x7b7   :  { %498 = vrot.lane.b32.xlu1 %v441_v39, %s1034_s18  ;;  %v458_v35 = vsel %vm445_vm5, %v441_v39, 0.0 }
 0x7b9   :  { %548 = vrot.lane.b32.xlu0 %v438_v9, %s1035_s2 }
 0x7bb   :  { %546 = vrot.lane.b32.xlu1 %v437_v12, %s1035_s2 }
 0x7bd   :  { %552 = vrot.lane.b32.xlu0 %v440_v31, %s1035_s2 }
 0x7bf   :  { %550 = vrot.lane.b32.xlu1 %v439_v32, %s1035_s2 }
 0x7c1   :  { %556 = vrot.lane.b32.xlu0 %v442_v36, %s1035_s2 }
 0x7c3   :  { %554 = vrot.lane.b32.xlu1 %v441_v39, %s1035_s2 }
 0x820   :  { %v928_v40 = vpop.f32.mrf.mxu1 }
 0x821   :  { %v422_v41 = vadd.f32 %v928_v40, %v295_v63 }
 0x822   :  { %v416_v42 = vpop.f32.mrf.mxu1 }
 0x823   :  { %v432_v43 = vmax.f32 %v422_v41, 0.0  ;;  %v417_v44 = vadd.f32 %v416_v42, %v295_v63  ;;  %v497_v54 = vpop.permute.xlu0 %496  ;;  %v517_v63 = vsel %vm445_vm5, %v493_v53, 0.0 }
 0x824   :  { %v523_v1 = vsel %vm445_vm5, %v497_v54, 0.0 }
 0x825   :  { %v444_v7 = vmul.f32 %v436_v3, %v432_v43  ;;  %v431_v46 = vmax.f32 %v417_v44, 0.0  ;;  %v495_v50 = vpop.permute.xlu1 %494 }
 0x826   :  { %v520_v55 = vsel %vm445_vm5, %v495_v50, 0.0 }
 0x827   :  { %v443_v47 = vmul.f32 %v436_v3, %v431_v46  ;;  %504 = vrot.lane.b32.xlu0 %v444_v7, %s1034_s18  ;;  %v467_v57 = vsel %vm445_vm5, %v444_v7, 0.0  ;;  %v501_v59 = vpop.permute.xlu0 %500 }
 0x828   :  { %v529_v6 = vsel %vm445_vm5, %v501_v59, 0.0 }
 0x829   :  { %502 = vrot.lane.b32.xlu1 %v443_v47, %s1034_s18  ;;  %v499_v38 = vpop.permute.xlu1 %498  ;;  %v464_v12 = vsel %vm445_vm5, %v443_v47, 0.0 }
 0x82a   :  { %v526_v58 = vsel %vm445_vm5, %v499_v38, 0.0 }
 0x82b   :  { %560 = vrot.lane.b32.xlu0 %v444_v7, %s1035_s2  ;;  %v549_v2 = vpop.permute.xlu0 %548 }
 0x82c   :  { %v573_v10 = vsel %vm445_vm5, %v549_v2, 0.0 }
 0x82d   :  { %558 = vrot.lane.b32.xlu1 %v443_v47, %s1035_s2  ;;  %v547_v56 = vpop.permute.xlu1 %546 }
 0x82e   :  { %v570_v0 = vsel %vm445_vm5, %v547_v56, 0.0 }
 0x82f   :  { %v553_v9 = vpop.permute.xlu0 %552 }
 0x830   :  { %v579_v13 = vsel %vm445_vm5, %v553_v9, 0.0 }
 0x831   :  { %v551_v61 = vpop.permute.xlu1 %550 }
 0x832   :  { %v576_v3 = vsel %vm445_vm5, %v551_v61, 0.0 }
 0x833   :  { %v557_v14 = vpop.permute.xlu0 %556 }
 0x834   :  { %v585_v16 = vsel %vm445_vm5, %v557_v14, 0.0 }
 0x835   :  { %v555_v5 = vpop.permute.xlu1 %554 }
 0x836   :  { %v582_v8 = vsel %vm445_vm5, %v555_v5, 0.0 }
 0x84a   :  { %450 = vadd.xlane.f32.xlu0 %v449_v49 }
 0x84e   :  { %453 = vadd.xlane.f32.xlu0 %v452_v28 }
 0x851   :  { %447 = vadd.xlane.f32.xlu1 %v446_v51 }
 0x852   :  { %459 = vadd.xlane.f32.xlu0 %v458_v35 }
 0x855   :  { %456 = vadd.xlane.f32.xlu1 %v455_v52 }
 0x856   :  { %515 = vadd.xlane.f32.xlu0 %v514_v45 }
 0x859   :  { %462 = vadd.xlane.f32.xlu1 %v461_v48 }
 0x85a   :  { %521 = vadd.xlane.f32.xlu0 %v520_v55 }
 0x85d   :  { %468 = vadd.xlane.f32.xlu1 %v467_v57 }
 0x85e   :  { %527 = vadd.xlane.f32.xlu0 %v526_v58 }
 0x861   :  { %518 = vadd.xlane.f32.xlu1 %v517_v63 }
 0x862   :  { %571 = vadd.xlane.f32.xlu0 %v570_v0 }
 0x865   :  { %524 = vadd.xlane.f32.xlu1 %v523_v1 }
 0x866   :  { %577 = vadd.xlane.f32.xlu0 %v576_v3 }
 0x869   :  { %530 = vadd.xlane.f32.xlu1 %v529_v6 }
 0x86a   :  { %583 = vadd.xlane.f32.xlu0 %v582_v8 }
 0x86d   :  { %574 = vadd.xlane.f32.xlu1 %v573_v10 }
 0x86e   :  { %465 = vadd.xlane.f32.xlu0 %v464_v12 }
 0x871   :  { %580 = vadd.xlane.f32.xlu1 %v579_v13 }
 0x875   :  { %586 = vadd.xlane.f32.xlu1 %v585_v16 }
 0x899   :  { %v505_v17 = vpop.permute.xlu0 %504 }
 0x89a   :  { %v535_v19 = vsel %vm445_vm5, %v505_v17, 0.0 }
 0x89b   :  { %v503_v20 = vpop.permute.xlu1 %502  ;;  %536 = vadd.xlane.f32.xlu1 %v535_v19 }
 0x89c   :  { %v532_v11 = vsel %vm445_vm5, %v503_v20, 0.0 }
 0x89d   :  { %v561_v23 = vpop.permute.xlu0 %560  ;;  %533 = vadd.xlane.f32.xlu0 %v532_v11 }
 0x89e   :  { %v591_v24 = vsel %vm445_vm5, %v561_v23, 0.0 }
 0x89f   :  { %v559_v26 = vpop.permute.xlu1 %558  ;;  %592 = vadd.xlane.f32.xlu1 %v591_v24 }
 0x8a0   :  { %v588_v27 = vsel %vm445_vm5, %v559_v26, 0.0 }
 0x8a1   :  { %589 = vadd.xlane.f32.xlu0 %v588_v27 }
 0x8d3   :  { %v451_v30 = vpop.xlane.xlu0 %450 }
 0x8d4   :  { %v475_v38 = vadd.f32 %v1297_v34, %v451_v30 }
 0x8d7   :  { %v454_v4 = vpop.xlane.xlu0 %453 }
 0x8d8   :  { %v1310_v50 = vadd.f32 %v1297_v34, %v454_v4 }
 0x8da   :  { %v448_v21 = vpop.xlane.xlu1 %447 }
 0x8db   :  { %v460_v31 = vpop.xlane.xlu0 %459  ;;  %v1303_v40 = vadd.f32 %v1297_v34, %v448_v21 }
 0x8dc   :  { %v478_v55 = vadd.f32 %v1297_v34, %v460_v31 }
 0x8de   :  { %v457_v15 = vpop.xlane.xlu1 %456 }
 0x8df   :  { %v516_v18 = vpop.xlane.xlu0 %515  ;;  %v1321_v58 = vadd.f32 %v1297_v34, %v457_v15 }
 0x8e0   :  { %v538_v39 = vadd.f32 %v516_v18, %v1297_v34 }
 0x8e2   :  { %v463_v32 = vpop.xlane.xlu1 %462  ;;  %v602_v43 = vmax.f32 %v1303_v40, %v538_v39 }
 0x8e3   :  { %v522_v33 = vpop.xlane.xlu0 %521  ;;  %v1327_v10 = vadd.f32 %v1297_v34, %v463_v32 }
 0x8e4   :  { %v540_v25 = vadd.f32 %v522_v33, %v1297_v34 }
 0x8e6   :  { %v1299_v36 = vpop.xlane.xlu1 %468  ;;  %v604_v45 = vmax.f32 %v1310_v50, %v540_v25 }
 0x8e7   :  { %v528_v37 = vpop.xlane.xlu0 %527 }
 0x8e8   :  { %v542_v52 = vadd.f32 %v528_v37, %v1297_v34 }
 0x8ea   :  { %v519_v41 = vpop.xlane.xlu1 %518  ;;  %v606_v61 = vmax.f32 %v478_v55, %v542_v52 }
 0x8eb   :  { %v572_v42 = vpop.xlane.xlu0 %571  ;;  %v539_v28 = vadd.f32 %v519_v41, %v1297_v34 }
 0x8ec   :  { %v594_v44 = vadd.f32 %v572_v42, %v1297_v34 }
 0x8ed   :  { %v603_v56 = vmax.f32 %v475_v38, %v539_v28 }
 0x8ee   :  { %v610_v60 = vmax.f32 %v602_v43, %v594_v44  ;;  %v525_v7 = vpop.xlane.xlu1 %524 }
 0x8ef   :  { %v578_v46 = vpop.xlane.xlu0 %577  ;;  %v541_v48 = vadd.f32 %v525_v7, %v1297_v34 }
 0x8f0   :  { %v642_v47 = vsub.f32 %v538_v39, %v610_v60  ;;  %v596_v51 = vadd.f32 %v578_v46, %v1297_v34  ;;  %v666_v26 = vsub.f32 %v594_v44, %v610_v60  ;;  %v618_v4 = vsub.f32 %v1303_v40, %v610_v60 }
 0x8f1   :  { %v605_v1 = vmax.f32 %v1321_v58, %v541_v48 }
 0x8f2   :  { %v650_v62 = vmul.f32 1.442695, %v642_v47  ;;  %v531_v49 = vpop.xlane.xlu1 %530  ;;  %v612_v59 = vmax.f32 %v604_v45, %v596_v51  ;;  %v674_v15 = vmul.f32 1.442695, %v666_v26  ;;  %v626_v33 = vmul.f32 1.442695, %v618_v4 }
 0x8f3   :  { %v584_v35 = vpop.xlane.xlu0 %583  ;;  %v543_v3 = vadd.f32 %v531_v49, %v1297_v34 }
 0x8f4   :  { %965 = vpow2.f32 %v650_v62  ;;  %v598_v57 = vadd.f32 %v584_v35, %v1297_v34  ;;  %v644_v8 = vsub.f32 %v540_v25, %v612_v59  ;;  %v668_v31 = vsub.f32 %v596_v51, %v612_v59 }
 0x8f5   :  { %v607_v16 = vmax.f32 %v1327_v10, %v543_v3  ;;  %v620_v37 = vsub.f32 %v1310_v50, %v612_v59 }
 0x8f6   :  { %v575_v53 = vpop.xlane.xlu1 %574  ;;  %v614_v5 = vmax.f32 %v606_v61, %v598_v57  ;;  %v654_v20 = vmul.f32 1.442695, %v644_v8  ;;  %v678_v39 = vmul.f32 1.442695, %v668_v31 }
 0x8f7   :  { %v595_v54 = vadd.f32 %v575_v53, %v1297_v34  ;;  %v630_v60 = vmul.f32 1.442695, %v620_v37 }
 0x8f8   :  { %v646_v17 = vsub.f32 %v542_v52, %v614_v5  ;;  %v622_v41 = vsub.f32 %v478_v55, %v614_v5  ;;  %v670_v42 = vsub.f32 %v598_v57, %v614_v5 }
 0x8f9   :  { %v611_v63 = vmax.f32 %v603_v56, %v595_v54 }
 0x8fa   :  { %v581_v0 = vpop.xlane.xlu1 %580  ;;  %v658_v27 = vmul.f32 1.442695, %v646_v17  ;;  %v634_v46 = vmul.f32 1.442695, %v622_v41  ;;  %v682_v47 = vmul.f32 1.442695, %v670_v42 }
 0x8fb   :  { %v597_v2 = vadd.f32 %v581_v0, %v1297_v34  ;;  %v643_v6 = vsub.f32 %v539_v28, %v611_v63  ;;  %v667_v30 = vsub.f32 %v595_v54, %v611_v63  ;;  %v619_v18 = vsub.f32 %v475_v38, %v611_v63 }
 0x8fd   :  { %v613_v9 = vmax.f32 %v605_v1, %v597_v2  ;;  %v652_v12 = vmul.f32 1.442695, %v643_v6  ;;  %v676_v22 = vmul.f32 1.442695, %v667_v30  ;;  %v628_v43 = vmul.f32 1.442695, %v619_v18  ;;  %v466_v1 = vpop.xlane.xlu0 %465 }
 0x8fe   :  { %v587_v13 = vpop.xlane.xlu1 %586 }
 0x8ff   :  { %v645_v14 = vsub.f32 %v541_v48, %v613_v9  ;;  %v599_v19 = vadd.f32 %v587_v13, %v1297_v34  ;;  %967 = vpow2.f32 %v652_v12  ;;  %v669_v32 = vsub.f32 %v597_v2, %v613_v9 }
 0x900   :  { %v621_v62 = vsub.f32 %v1321_v58, %v613_v9  ;;  %v481_v13 = vadd.f32 %v1297_v34, %v1299_v36 }
 0x901   :  { %v656_v11 = vmul.f32 1.442695, %v645_v14  ;;  %v1331_v23 = vpop.eup %965  ;;  %v615_v24 = vmax.f32 %v607_v16, %v599_v19  ;;  %v680_v44 = vmul.f32 1.442695, %v669_v32  ;;  %v480_v16 = vadd.f32 %v1297_v34, %v466_v1 }
 0x902   :  { %714 = vrot.lane.b32.xlu0 %v1331_v23, %s1037_s0  ;;  %v632_v50 = vmul.f32 1.442695, %v621_v62 }
 0x903   :  { %969 = vpow2.f32 %v656_v11  ;;  %v647_v29 = vsub.f32 %v543_v3, %v615_v24  ;;  %v671_v7 = vsub.f32 %v599_v19, %v615_v24  ;;  %v623_v35 = vsub.f32 %v1327_v10, %v615_v24 }
 0x904   :  { %971 = vpow2.f32 %v654_v20 }
 0x905   :  { %v660_v21 = vmul.f32 1.442695, %v647_v29  ;;  %973 = vpow2.f32 %v658_v27  ;;  %v684_v25 = vmul.f32 1.442695, %v671_v7  ;;  %v636_v53 = vmul.f32 1.442695, %v623_v35 }
 0x907   :  { %975 = vpow2.f32 %v660_v21 }
 0x908   :  { %977 = vpow2.f32 %v674_v15 }
 0x909   :  { %979 = vpow2.f32 %v676_v22 }
 0x90a   :  { %981 = vpow2.f32 %v626_v33 }
 0x90b   :  { %983 = vpow2.f32 %v678_v39 }
 0x90c   :  { %v968_v40 = vpop.eup %967  ;;  %985 = vpow2.f32 %v628_v43 }
 0x90d   :  { %716 = vrot.lane.b32.xlu1 %v968_v40, %s1037_s0  ;;  %987 = vpow2.f32 %v680_v44 }
 0x90e   :  { %989 = vpow2.f32 %v630_v60 }
 0x90f   :  { %991 = vpow2.f32 %v634_v46 }
 0x910   :  { %v970_v49 = vpop.eup %969  ;;  %993 = vpow2.f32 %v682_v47 }
 0x911   :  { %v972_v28 = vpop.eup %971  ;;  %720 = vrot.lane.b32.xlu0 %v970_v49, %s1037_s0  ;;  %995 = vpow2.f32 %v684_v25 }
 0x912   :  { %718 = vrot.lane.b32.xlu1 %v972_v28, %s1037_s0  ;;  %v974_v51 = vpop.eup %973  ;;  %997 = vpow2.f32 %v632_v50 }
 0x913   :  { %999 = vpow2.f32 %v636_v53 }
 0x914   :  { %v976_v38 = vpop.eup %975 }
 0x915   :  { %724 = vrot.lane.b32.xlu0 %v976_v38, %s1037_s0  ;;  %v978_v52 = vpop.eup %977 }
 0x916   :  { %722 = vrot.lane.b32.xlu1 %v974_v51, %s1037_s0  ;;  %v980_v45 = vpop.eup %979 }
 0x917   :  { %v1344_v48 = vpop.eup %981 }
 0x918   :  { %v984_v54 = vpop.eup %983  ;;  %v690_v59 = vadd.f32 %v1344_v48, %v1331_v23 }
 0x919   :  { %748 = vrot.lane.b32.xlu0 %v980_v45, %s1038_s1  ;;  %v1348_v55 = vpop.eup %985 }
 0x91a   :  { %746 = vrot.lane.b32.xlu1 %v978_v52, %s1038_s1  ;;  %v988_v56 = vpop.eup %987  ;;  %v691_v63 = vadd.f32 %v1348_v55, %v968_v40  ;;  %v698_v3 = vadd.f32 %v978_v52, %v690_v59 }
 0x91b   :  { %v1350_v57 = vpop.eup %989 }
 0x91c   :  { %v1354_v58 = vpop.eup %991  ;;  %v699_v8 = vadd.f32 %v980_v45, %v691_v63  ;;  %v692_v9 = vadd.f32 %v1350_v57, %v972_v28 }
 0x91d   :  { %752 = vrot.lane.b32.xlu0 %v988_v56, %s1038_s1  ;;  %v994_v61 = vpop.eup %993  ;;  %v694_v10 = vadd.f32 %v1354_v58, %v974_v51 }
 0x91e   :  { %750 = vrot.lane.b32.xlu1 %v984_v54, %s1038_s1  ;;  %v996_v0 = vpop.eup %995  ;;  %v700_v23 = vadd.f32 %v984_v54, %v692_v9 }
 0x91f   :  { %v1361_v5 = vpop.eup %997  ;;  %v702_v24 = vadd.f32 %v994_v61, %v694_v10 }
 0x920   :  { %v693_v19 = vadd.f32 %v1361_v5, %v970_v49  ;;  %v1372_v26 = vpop.eup %999 }
 0x921   :  { %756 = vrot.lane.b32.xlu0 %v996_v0, %s1038_s1  ;;  %v695_v18 = vadd.f32 %v1372_v26, %v976_v38 }
 0x922   :  { %754 = vrot.lane.b32.xlu1 %v994_v61, %s1038_s1  ;;  %v701_v4 = vadd.f32 %v988_v56, %v693_v19 }
 0x923   :  { %v703_v43 = vadd.f32 %v996_v0, %v695_v18 }
 0x924   :  { %v537_v2 = vpop.xlane.xlu1 %536 }
 0x925   :  { %v545_v6 = vadd.f32 %v537_v2, %v1297_v34  ;;  %795 = vperm.xlu0 %964, %v699_v8  }
 0x926   :  { %v534_v12 = vpop.xlane.xlu0 %533  ;;  %790 = vperm.xlu1 %963, %v698_v3  }
 0x927   :  { %v544_v14 = vadd.f32 %v534_v12, %v1297_v34  ;;  %v609_v20 = vmax.f32 %v481_v13, %v545_v6 }
 0x928   :  { %v593_v17 = vpop.xlane.xlu1 %592 }
 0x929   :  { %v601_v11 = vadd.f32 %v593_v17, %v1297_v34  ;;  %v608_v29 = vmax.f32 %v480_v16, %v544_v14  ;;  %810 = vperm.xlu0 %964, %v702_v24  }
 0x92a   :  { %v590_v27 = vpop.xlane.xlu0 %589  ;;  %800 = vperm.xlu1 %963, %v700_v23  }
 0x92b   :  { %v617_v30 = vmax.f32 %v609_v20, %v601_v11  ;;  %v600_v36 = vadd.f32 %v590_v27, %v1297_v34 }
 0x92d   :  { %v625_v21 = vsub.f32 %v481_v13, %v617_v30  ;;  %v649_v31 = vsub.f32 %v545_v6, %v617_v30  ;;  %v616_v15 = vmax.f32 %v608_v29, %v600_v36  ;;  %v673_v22 = vsub.f32 %v601_v11, %v617_v30 }
 0x92e   :  { %805 = vperm.xlu1 %963, %v701_v4  }
 0x92f   :  { %v640_v32 = vmul.f32 1.442695, %v625_v21  ;;  %v664_v33 = vmul.f32 1.442695, %v649_v31  ;;  %v624_v37 = vsub.f32 %v480_v16, %v616_v15  ;;  %v648_v39 = vsub.f32 %v544_v14, %v616_v15 }
 0x930   :  { %v672_v41 = vsub.f32 %v600_v36, %v616_v15  ;;  %v688_v44 = vmul.f32 1.442695, %v673_v22 }
 0x931   :  { %v638_v42 = vmul.f32 1.442695, %v624_v37  ;;  %1001 = vpow2.f32 %v664_v33  ;;  %v662_v7 = vmul.f32 1.442695, %v648_v39 }
 0x932   :  { %1003 = vpow2.f32 %v640_v32  ;;  %815 = vperm.xlu1 %963, %v703_v43   ;;  %v686_v34 = vmul.f32 1.442695, %v672_v41 }
 0x933   :  { %1005 = vpow2.f32 %v638_v42 }
 0x934   :  { %1007 = vpow2.f32 %v662_v7 }
 0x935   :  { %1009 = vpow2.f32 %v688_v44 }
 0x936   :  { %1011 = vpow2.f32 %v686_v34 }
 0x93e   :  { %v1002_v40 = vpop.eup %1001 }
 0x93f   :  { %v1376_v60 = vpop.eup %1003  ;;  %728 = vrot.lane.b32.xlu0 %v1002_v40, %s1037_s0 }
 0x940   :  { %v1379_v46 = vpop.eup %1005  ;;  %v697_v28 = vadd.f32 %v1376_v60, %v1002_v40 }
 0x941   :  { %v1008_v47 = vpop.eup %1007 }
 0x942   :  { %v1010_v62 = vpop.eup %1009  ;;  %726 = vrot.lane.b32.xlu1 %v1008_v47, %s1037_s0  ;;  %v696_v49 = vadd.f32 %v1008_v47, %v1379_v46 }
 0x943   :  { %760 = vrot.lane.b32.xlu0 %v1010_v62, %s1038_s1  ;;  %v1012_v25 = vpop.eup %1011  ;;  %v705_v51 = vadd.f32 %v1010_v62, %v697_v28 }
 0x944   :  { %v704_v50 = vadd.f32 %v1012_v25, %v696_v49 }
 0x946   :  { %758 = vrot.lane.b32.xlu1 %v1012_v25, %s1038_s1 }
 0x947   :  { %820 = vperm.xlu0 %964, %v704_v50  }
 0x94a   :  { %825 = vperm.xlu1 %963, %v705_v51  }
 0x974   :  { %v715_v38 = vpop.permute.xlu0 %714 }
 0x975   :  { %v771_v14 = vsel %vm770_vm6, %v1344_v48, %v715_v38 }
 0x97f   :  { %v717_v35 = vpop.permute.xlu1 %716 }
 0x980   :  { %v772_v12 = vsel %vm770_vm6, %v1348_v55, %v717_v35 }
 0x983   :  { %v721_v52 = vpop.permute.xlu0 %720 }
 0x984   :  { %v719_v53 = vpop.permute.xlu1 %718  ;;  %v774_v36 = vsel %vm770_vm6, %v1361_v5, %v721_v52 }
 0x985   :  { %v773_v48 = vsel %vm770_vm6, %v1350_v57, %v719_v53 }
 0x987   :  { %v725_v45 = vpop.permute.xlu0 %724 }
 0x988   :  { %v723_v54 = vpop.permute.xlu1 %722  ;;  %v776_v15 = vsel %vm770_vm6, %v1372_v26, %v725_v45 }
 0x989   :  { %v775_v23 = vsel %vm770_vm6, %v1354_v58, %v723_v54 }
 0x98b   :  { %v749_v56 = vpop.permute.xlu0 %748 }
 0x98c   :  { %v747_v59 = vpop.permute.xlu1 %746  ;;  %v781_v16 = vsel %vm779_vm7, %v772_v12, %v749_v56 }
 0x98d   :  { %v780_v19 = vsel %vm779_vm7, %v771_v14, %v747_v59 }
 0x98f   :  { %v753_v61 = vpop.permute.xlu0 %752 }
 0x990   :  { %v751_v63 = vpop.permute.xlu1 %750  ;;  %v783_v4 = vsel %vm779_vm7, %v774_v36, %v753_v61 }
 0x991   :  { %v782_v29 = vsel %vm779_vm7, %v773_v48, %v751_v63 }
 0x993   :  { %v757_v0 = vpop.permute.xlu0 %756 }
 0x994   :  { %v755_v1 = vpop.permute.xlu1 %754  ;;  %v785_v18 = vsel %vm779_vm7, %v776_v15, %v757_v0 }
 0x995   :  { %v784_v24 = vsel %vm779_vm7, %v775_v23, %v755_v1 }
 0x9a0   :  { %v796_v2 = vpop.permute.xlu0 %795 }
 0x9a1   :  { %v791_v3 = vpop.permute.xlu1 %790  ;;  %1013 = vrcp.f32 %v796_v2 }
 0x9a2   :  { %1015 = vrcp.f32 %v791_v3 }
 0x9a4   :  { %v811_v6 = vpop.permute.xlu0 %810 }
 0x9a5   :  { %v801_v8 = vpop.permute.xlu1 %800  ;;  %1017 = vrcp.f32 %v811_v6 }
 0x9a6   :  { %1019 = vrcp.f32 %v801_v8 }
 0x9a9   :  { %v806_v9 = vpop.permute.xlu1 %805 }
 0x9aa   :  { %1021 = vrcp.f32 %v806_v9 }
 0x9ad   :  { %v816_v10 = vpop.permute.xlu1 %815 }
 0x9ae   :  { %1023 = vrcp.f32 %v816_v10  ;;  %v1014_v13 = vpop.eup %1013 }
 0x9af   :  { %v1016_v17 = vpop.eup %1015  ;;  %v831_v20 = vmul.f32 %v1014_v13, %v781_v16 }
 0x9b0   :  { %v829_v11 = vmul.f32 %v1016_v17, %v780_v19 }
 0x9b1   :  { %846 = vst.msk [vmem:[%s1445_s3 + $0x8] sm:$0xff] %vm844_vm8, %v831_v20  ;;  %v729_v31 = vpop.permute.xlu0 %728 }
 0x9b2   :  { %v1018_v55 = vpop.eup %1017  ;;  %845 = vst.msk [vmem:[%s1445_s3] sm:$0xff] %vm844_vm8, %v829_v11  ;;  %v778_v7 = vsel %vm770_vm6, %v1376_v60, %v729_v31 }
 0x9b3   :  { %v1020_v27 = vpop.eup %1019  ;;  %v837_v58 = vmul.f32 %v1018_v55, %v784_v24 }
 0x9b4   :  { %v833_v30 = vmul.f32 %v1020_v27, %v782_v29  ;;  %v727_v22 = vpop.permute.xlu1 %726 }
 0x9b5   :  { %849 = vst.msk [vmem:[%s1445_s3 + $0x20] sm:$0xff] %vm844_vm8, %v837_v58  ;;  %v761_v33 = vpop.permute.xlu0 %760  ;;  %v777_v41 = vsel %vm770_vm6, %v1379_v46, %v727_v22 }
 0x9b6   :  { %847 = vst.msk [vmem:[%s1445_s3 + $0x10] sm:$0xff] %vm844_vm8, %v833_v30  ;;  %v787_v40 = vsel %vm779_vm7, %v778_v7, %v761_v33 }
 0x9b7   :  { %v1022_v57 = vpop.eup %1021 }
 0x9b8   :  { %v835_v21 = vmul.f32 %v1022_v57, %v783_v4  ;;  %v759_v37 = vpop.permute.xlu1 %758 }
 0x9b9   :  { %v786_v43 = vsel %vm779_vm7, %v777_v41, %v759_v37 }
 0x9ba   :  { %848 = vst.msk [vmem:[%s1445_s3 + $0x18] sm:$0xff] %vm844_vm8, %v835_v21 }
 0x9bb   :  { %v1024_v5 = vpop.eup %1023 }
 0x9bc   :  { %v839_v32 = vmul.f32 %v1024_v5, %v785_v18 }
 0x9be   :  { %850 = vst.msk [vmem:[%s1445_s3 + $0x28] sm:$0xff] %vm844_vm8, %v839_v32 }
 0x9c2   :  { %v821_v39 = vpop.permute.xlu0 %820 }
 0x9c3   :  { %1025 = vrcp.f32 %v821_v39 }
 0x9c5   :  { %v826_v26 = vpop.permute.xlu1 %825 }
 0x9c6   :  { %1027 = vrcp.f32 %v826_v26 }
 0x9d0   :  { %v1026_v42 = vpop.eup %1025 }
 0x9d1   :  { %v841_v44 = vmul.f32 %v1026_v42, %v786_v43 }
 0x9d3   :  { %v1028_v34 = vpop.eup %1027  ;;  %851 = vst.msk [vmem:[%s1445_s3 + $0x30] sm:$0xff] %vm844_vm8, %v841_v44 }
 0x9d4   :  { %v843_v47 = vmul.f32 %v1028_v34, %v787_v40 }
 0x9d6   :  { %852 = vst.msk [vmem:[%s1445_s3 + $0x38] sm:$0xff] %vm844_vm8, %v843_v47 }

</bundles_post_ra>
